<compile_context>
chip_gen: v6e
topology: v6e:2x2x1
jax: 0.10.0
libtpu: 0.0.40
codegen_flags: <defaults>
</compile_context>

<pallas_src>
import functools

import jax
import jax.numpy as jnp
from jax import lax
from jax.experimental import pallas as pl
from jax.experimental.pallas import tpu as pltpu


# ----------------------------------------------------------------------------
# Per-generation VMEM budget
# ----------------------------------------------------------------------------
def _vmem_limit_bytes():
    """~3/4 of physical VMEM, capped at 96 MiB.

    v5e/v6e (128 MiB physical) -> 96 MiB; v7x (64 MiB) -> 48 MiB.
    Conservative 32 MiB fallback if the query is unavailable."""
    try:
        info = pltpu.get_tpu_info()
        cap = getattr(info, "vmem_capacity_bytes", None)
        if cap:
            return int(min(cap * 3 // 4, 96 * 1024 * 1024))
    except Exception:
        pass
    return 32 * 1024 * 1024


_VMEM_LIMIT = _vmem_limit_bytes()


def _pick_tile(dim, candidates):
    """Largest candidate that evenly divides `dim`; fall back to the full extent
    (a full-extent block is always legal w.r.t. the (8, 128) tiling rule)."""
    for c in candidates:
        if c <= dim and dim % c == 0:
            return c
    return dim


# ----------------------------------------------------------------------------
# Kernel 1: tiled matmul (QKV projection)
# ----------------------------------------------------------------------------
def _linear_fullk_kernel(x_ref, w_ref, o_ref):
    # Whole-K contraction for this (i, j) tile: one MXU pass, one store,
    # no accumulator scratch and no k grid axis.
    o_ref[...] = jnp.dot(
        x_ref[...].astype(jnp.bfloat16), w_ref[...],
        preferred_element_type=jnp.float32,
    ).astype(o_ref.dtype)


def _linear_kloop_kernel(x_ref, w_ref, o_ref, acc_ref):
    @pl.when(pl.program_id(2) == 0)
    def _():
        acc_ref[...] = jnp.zeros_like(acc_ref)

    acc_ref[...] += jnp.dot(
        x_ref[...].astype(jnp.bfloat16), w_ref[...],
        preferred_element_type=jnp.float32,
    )

    @pl.when(pl.program_id(2) == pl.num_programs(2) - 1)
    def _():
        o_ref[...] = acc_ref[...].astype(o_ref.dtype)


def linear_no_bias(x2d, w_kn, out_dtype):
    """x2d: (M, K) float, w_kn: (K, N) bf16 -> (M, N) out_dtype on the MXU.

    x is cast to bf16 in-kernel; accumulation is f32. When the full-K blocks fit
    the VMEM budget the K grid axis is collapsed entirely."""
    M, K = x2d.shape
    K2, N = w_kn.shape
    assert K == K2

    tm = _pick_tile(M, (512, 256, 128))
    tn = _pick_tile(N, (512, 256, 128))   # 512/256 preferred: v6e/v7x MXU is 2x256^2

    x_b = x2d.dtype.itemsize
    w_b = w_kn.dtype.itemsize
    o_b = jnp.dtype(out_dtype).itemsize
    budget = max(_VMEM_LIMIT // 2, 8 * 1024 * 1024)  # headroom for pipeline bufs

    def _fits(tk_, with_acc):
        vbytes = 2 * (tm * tk_ * x_b + tk_ * tn * w_b) + 2 * tm * tn * o_b
        if with_acc:
            vbytes += tm * tn * 4
        return vbytes <= budget

    tk = None
    for c in (K, 512, 256, 128):           # prefer collapsing K entirely
        if c <= K and K % c == 0 and _fits(c, with_acc=(c != K)):
            tk = c
            break
    if tk is None:
        tk = _pick_tile(K, (256, 128, 64, 32, 16, 8))

    cost = pl.CostEstimate(
        flops=2 * M * N * K,
        transcendentals=0,
        bytes_accessed=M * K * x_b + K * N * w_b + M * N * o_b,
    )

    if tk == K:
        return pl.pallas_call(
            _linear_fullk_kernel,
            out_shape=jax.ShapeDtypeStruct((M, N), out_dtype),
            grid=(M // tm, N // tn),
            in_specs=[
                pl.BlockSpec((tm, K), lambda i, j: (i, 0)),
                pl.BlockSpec((K, tn), lambda i, j: (0, j)),
            ],
            out_specs=pl.BlockSpec((tm, tn), lambda i, j: (i, j)),
            compiler_params=pltpu.CompilerParams(
                dimension_semantics=("parallel", "parallel"),
                vmem_limit_bytes=_VMEM_LIMIT,
            ),
            cost_estimate=cost,
        )(x2d, w_kn)

    return pl.pallas_call(
        _linear_kloop_kernel,
        out_shape=jax.ShapeDtypeStruct((M, N), out_dtype),
        grid=(M // tm, N // tn, K // tk),
        in_specs=[
            pl.BlockSpec((tm, tk), lambda i, j, k: (i, k)),
            pl.BlockSpec((tk, tn), lambda i, j, k: (k, j)),
        ],
        out_specs=pl.BlockSpec((tm, tn), lambda i, j, k: (i, j)),
        scratch_shapes=[pltpu.VMEM((tm, tn), jnp.float32)],
        compiler_params=pltpu.CompilerParams(
            dimension_semantics=("parallel", "parallel", "arbitrary"),
            vmem_limit_bytes=_VMEM_LIMIT,
        ),
        cost_estimate=cost,
    )(x2d, w_kn)


# ----------------------------------------------------------------------------
# Kernel 2: fused attention core + output projection
# ----------------------------------------------------------------------------
def _mha_fused_kernel(q_ref, kv_ref, w_out_ref, o_ref, *, head_num, head_dim,
                      heads_per_group):
    """One (batch, q-row-tile) grid step.

    q_ref:     (1, tq, 3E) bf16 — q rows for this tile (only columns [0, E) are
                                  read; q already carries the sqrt(D) scale).
    kv_ref:    (1, T,  3E) bf16 — all rows (columns [E, 3E) read); its block
                                  index is constant across q tiles -> resident.
    w_out_ref: (E, E)      bf16 — out-projection weight^T, rows in '(h d)' order,
                                  resident across the whole grid.
    o_ref:     (1, tq, E)  f32  — final projected output rows.
    """
    E = head_num * head_dim
    D = head_dim
    GD = heads_per_group * D

    o_ref[...] = jnp.zeros_like(o_ref)

    for g in range(head_num // heads_per_group):
        pv_parts = []
        for j in range(heads_per_group):
            lo = (g * heads_per_group + j) * D
            # Static ref slices: only the needed (tq/T, D) tiles are loaded.
            q = q_ref[0, :, lo:lo + D]                        # (tq, D) bf16
            k = kv_ref[0, :, E + lo:E + lo + D]               # (T,  D) bf16
            v = kv_ref[0, :, 2 * E + lo:2 * E + lo + D]       # (T,  D) bf16

            # energy = q @ k^T  (contract last dims; no explicit transpose)
            s = lax.dot_general(q, k, (((1,), (1,)), ((), ())),
                                preferred_element_type=jnp.float32)  # (tq, T)

            # numerically-stable softmax; denominator reciprocal on the EUP
            m = jnp.max(s, axis=-1, keepdims=True)
            p = jnp.exp(s - m)
            inv = pl.reciprocal(jnp.sum(p, axis=-1, keepdims=True), approx=True)

            pv = jnp.dot(p.astype(jnp.bfloat16), v,
                         preferred_element_type=jnp.float32)          # (tq, D)
            pv_parts.append((pv * inv).astype(jnp.bfloat16))

        # Group-local concat (2-4 pieces, consumed immediately) widens the
        # out-projection contraction to GD lanes (=128 at D=64).
        pv_grp = pv_parts[0] if heads_per_group == 1 else jnp.concatenate(pv_parts, -1)
        w_blk = w_out_ref[g * GD:(g + 1) * GD, :]                     # (GD, E) bf16
        o_ref[0, :, :] += jnp.dot(pv_grp, w_blk,
                                  preferred_element_type=jnp.float32)


def attention_fused(qkv, w_out_t, head_num, out_dtype):
    """qkv: (B, T, 3E) bf16 in per-head-contiguous '(k h d)' layout.
    Returns (B, T, E) = (softmax(q k^T * sqrt(D)) v) @ w_out^T  (fused)."""
    B, T, E3 = qkv.shape
    E = E3 // 3
    D = E // head_num

    # Widest head group whose concatenated PV stays lane-dense (<= 128 lanes).
    hpg = 1
    for c in range(head_num, 0, -1):
        if head_num % c == 0 and c * D <= 128:
            hpg = c
            break

    # q-row tile: second "parallel" grid axis (pipelining + v7x dual-core for
    # small B); full-T fallback keeps the (8, 128) block rule satisfied.
    tq = _pick_tile(T, (512, 256, 128, 64, 32, 16, 8))

    kern = functools.partial(_mha_fused_kernel, head_num=head_num, head_dim=D,
                             heads_per_group=hpg)
    cost = pl.CostEstimate(
        flops=4 * B * T * T * E + 2 * B * T * E * E,
        transcendentals=B * head_num * T * T,
        bytes_accessed=(B * T * E3 * qkv.dtype.itemsize
                        + E * E * w_out_t.dtype.itemsize
                        + B * T * E * jnp.dtype(out_dtype).itemsize),
    )

    return pl.pallas_call(
        kern,
        out_shape=jax.ShapeDtypeStruct((B, T, E), out_dtype),
        grid=(B, T // tq),
        in_specs=[
            pl.BlockSpec((1, tq, E3), lambda b, qi: (b, qi, 0)),  # q rows
            pl.BlockSpec((1, T, E3), lambda b, qi: (b, 0, 0)),    # K/V (resident / b)
            pl.BlockSpec((E, E), lambda b, qi: (0, 0)),           # w_out^T (resident)
        ],
        out_specs=pl.BlockSpec((1, tq, E), lambda b, qi: (b, qi, 0)),
        compiler_params=pltpu.CompilerParams(
            dimension_semantics=("parallel", "parallel"),
            vmem_limit_bytes=_VMEM_LIMIT,
        ),
        cost_estimate=cost,
    )(qkv, qkv, w_out_t)


# ----------------------------------------------------------------------------
# One-time weight prep (hoisted out of the per-call path)
# ----------------------------------------------------------------------------
def prepare_weights(w_qkv, w_out, head_num):
    """Permute W_qkv rows '(d k h)' -> '(k h d)' so each head's q/k/v is a
    contiguous D-wide column slice, fold sqrt(D) into the q rows (the module
    MULTIPLIES by it), transpose to (in, out) and cast to bf16."""
    out3, E = w_qkv.shape
    H = head_num
    D = E // H
    assert out3 == 3 * E and E % H == 0

    # old fused row index (einops '(d k h)', d slowest, h fastest):
    #   r_old = d*(3H) + k*H + h ; new order '(k h d)': r_new = k*E + h*D + d
    kk, hh, dd = jnp.meshgrid(jnp.arange(3), jnp.arange(H), jnp.arange(D),
                              indexing="ij")
    perm = (dd * (3 * H) + kk * H + hh).reshape(-1)        # new row -> old row
    w_qkv_p = w_qkv[perm]                                  # (3E, E)
    q_scale = jnp.concatenate([
        jnp.full((E,), float(D) ** 0.5, dtype=w_qkv_p.dtype),
        jnp.ones((2 * E,), dtype=w_qkv_p.dtype),
    ])
    w_qkv_p = w_qkv_p * q_scale[:, None]

    return {
        "w_qkv_t": w_qkv_p.T.astype(jnp.bfloat16),         # (E, 3E)
        "w_out_t": w_out.T.astype(jnp.bfloat16),           # (E, E), rows '(h d)'
    }


# ----------------------------------------------------------------------------
# Module wrapper
# ----------------------------------------------------------------------------
def multi_head_attention(x, params, head_num):
    """Pallas implementation of MultiHeadAttention.forward (mask=None path).

    x: (B, T, E) float32; params = prepare_weights(w_qkv, w_out, head_num)."""
    # TODO(synk): optional `mask` argument (masked_fill -inf before the row max).
    B, T, E = x.shape
    qkv = linear_no_bias(x.reshape(B * T, E), params["w_qkv_t"],
                         out_dtype=jnp.bfloat16).reshape(B, T, 3 * E)
    return attention_fused(qkv, params["w_out_t"], head_num, out_dtype=x.dtype)


# ----------------------------------------------------------------------------
# Pure-JAX reference (mirrors the PyTorch forward exactly) for verification
# ----------------------------------------------------------------------------
def reference(x, w_qkv, w_out, head_num):
    B, T, E = x.shape
    H = head_num
    D = E // H
    dk = float(D) ** 0.5
    qkv = x @ w_qkv.T
    qkv = qkv.reshape(B, T, D, 3, H)
    qkv = jnp.transpose(qkv, (3, 0, 4, 1, 2))
    q, k, v = qkv[0], qkv[1], qkv[2]
    energy = jnp.einsum("bhid,bhjd->bhij", q, k) * dk
    attn = jax.nn.softmax(energy, axis=-1)
    out = jnp.einsum("bhij,bhjd->bhid", attn, v)
    out = jnp.transpose(out, (0, 2, 1, 3)).reshape(B, T, E)
    return out @ w_out.T


if __name__ == "__main__":
    B, T, E, H = 2, 8, 32, 4

    key = jax.random.PRNGKey(0)
    kx, kq, ko = jax.random.split(key, 3)
    x = jax.random.normal(kx, (B, T, E), dtype=jnp.float32)
    # deterministic synthetic weights (nn.Linear weight shapes: (out, in))
    w_qkv = jax.random.normal(kq, (3 * E, E), dtype=jnp.float32) * 0.05
    w_out = jax.random.normal(ko, (E, E), dtype=jnp.float32) * 0.05

    params = prepare_weights(w_qkv, w_out, H)              # one-time, outside jit
    mha = jax.jit(multi_head_attention, static_argnums=(2,))
    y = jax.block_until_ready(mha(x, params, H))

    y_ref = reference(x, w_qkv, w_out, H)
    assert y.shape == (B, T, E)
    # tolerance covers the bf16 MXU operands + EUP approx-reciprocal softmax denom
    assert jnp.allclose(y, y_ref, atol=2e-2, rtol=2e-2), "mismatch vs reference"

    print("KERNEL_OK")
</pallas_src>

<mosaic_0001>
module attributes {stable_mosaic.version = 11 : i64} {
  func.func @_linear_fullk_kernel(%arg0: i32, %arg1: i32, %arg2: memref<16x32xf32, #tpu.memory_space<vmem>>, %arg3: memref<32x96xbf16, #tpu.memory_space<vmem>>, %arg4: memref<16x96xbf16, #tpu.memory_space<vmem>>) attributes {dimension_semantics = [#tpu.dimension_semantics<parallel>, #tpu.dimension_semantics<parallel>], iteration_bounds = array<i64: 1, 1>, scalar_prefetch = 0 : i64, scratch_operands = 0 : i64, tpu.core_type = #tpu.core_type<tc>, window_params = [{transform_indices = @transform_0, window_bounds = array<i64: 16, 32>}, {transform_indices = @transform_1, window_bounds = array<i64: 32, 96>}, {transform_indices = @transform_2, window_bounds = array<i64: 16, 96>}]} {
    %c0 = arith.constant 0 : index
    %c0_0 = arith.constant 0 : index
    %0 = vector.load %arg2[%c0, %c0_0] : memref<16x32xf32, #tpu.memory_space<vmem>>, vector<16x32xf32>
    %1 = arith.truncf %0 : vector<16x32xf32> to vector<16x32xbf16>
    %c0_1 = arith.constant 0 : index
    %c0_2 = arith.constant 0 : index
    %2 = vector.load %arg3[%c0_1, %c0_2] : memref<32x96xbf16, #tpu.memory_space<vmem>>, vector<32x96xbf16>
    %cst = arith.constant dense<0.000000e+00> : vector<16x96xf32>
    %3 = tpu.matmul %1, %2, %cst {dimension_numbers = #tpu.dot_dimension_numbers<[1], [0], [0], [1], [0, 0, 1, 1], [], []>} : vector<16x32xbf16>, vector<32x96xbf16>, vector<16x96xf32> -> vector<16x96xf32>
    %4 = arith.truncf %3 : vector<16x96xf32> to vector<16x96xbf16>
    %c0_3 = arith.constant 0 : index
    %c0_4 = arith.constant 0 : index
    %5 = vector.load %arg4[%c0_3, %c0_4] : memref<16x96xbf16, #tpu.memory_space<vmem>>, vector<16x96xbf16>
    tpu.vector_store %arg4[%c0_3, %c0_4], %4 {strides = array<i32>} : memref<16x96xbf16, #tpu.memory_space<vmem>>, vector<16x96xbf16>,
    return
  }
  func.func @transform_0(%arg0: i32, %arg1: i32) -> (i32, i32) {
    %c0_i32 = arith.constant 0 : i32
    %c0_i32_0 = arith.constant 0 : i32
    return %arg0, %c0_i32 : i32, i32
  }
  func.func @transform_1(%arg0: i32, %arg1: i32) -> (i32, i32) {
    %c0_i32 = arith.constant 0 : i32
    %c0_i32_0 = arith.constant 0 : i32
    return %c0_i32, %arg1 : i32, i32
  }
  func.func @transform_2(%arg0: i32, %arg1: i32) -> (i32, i32) {
    %c0_i32 = arith.constant 0 : i32
    return %arg0, %arg1 : i32, i32
  }
}

module attributes {stable_mosaic.version = 11 : i64} {
  func.func @_mha_fused_kernel(%arg0: i32, %arg1: i32, %arg2: memref<1x8x96xbf16, #tpu.memory_space<vmem>>, %arg3: memref<1x8x96xbf16, #tpu.memory_space<vmem>>, %arg4: memref<32x32xbf16, #tpu.memory_space<vmem>>, %arg5: memref<1x8x32xf32, #tpu.memory_space<vmem>>) attributes {dimension_semantics = [#tpu.dimension_semantics<parallel>, #tpu.dimension_semantics<parallel>], iteration_bounds = array<i64: 2, 1>, scalar_prefetch = 0 : i64, scratch_operands = 0 : i64, tpu.core_type = #tpu.core_type<tc>, window_params = [{transform_indices = @transform_0, window_bounds = array<i64: 1, 8, 96>}, {transform_indices = @transform_1, window_bounds = array<i64: 1, 8, 96>}, {pipeline_mode = #tpu.pipeline_mode<synchronous>, transform_indices = @transform_2, window_bounds = array<i64: 32, 32>}, {transform_indices = @transform_3, window_bounds = array<i64: 1, 8, 32>}]} {
    %cst = arith.constant 0.000000e+00 : f32
    %0 = vector.broadcast %cst : f32 to vector<1x8x32xf32>
    %c0 = arith.constant 0 : index
    %c0_0 = arith.constant 0 : index
    %c0_1 = arith.constant 0 : index
    %1 = vector.load %arg5[%c0, %c0_0, %c0_1] : memref<1x8x32xf32, #tpu.memory_space<vmem>>, vector<1x8x32xf32>
    tpu.vector_store %arg5[%c0, %c0_0, %c0_1], %0 {strides = array<i32>} : memref<1x8x32xf32, #tpu.memory_space<vmem>>, vector<1x8x32xf32>,
    %c0_2 = arith.constant 0 : index
    %c0_3 = arith.constant 0 : index
    %c0_4 = arith.constant 0 : index
    %2 = vector.load %arg2[%c0_2, %c0_3, %c0_4] : memref<1x8x96xbf16, #tpu.memory_space<vmem>>, vector<1x8x8xbf16>
    %3 = vector.shape_cast %2 : vector<1x8x8xbf16> to vector<8x8xbf16>
    %c0_5 = arith.constant 0 : index
    %c0_6 = arith.constant 0 : index
    %c32 = arith.constant 32 : index
    %4 = vector.load %arg3[%c0_5, %c0_6, %c32] : memref<1x8x96xbf16, #tpu.memory_space<vmem>>, vector<1x8x8xbf16>
    %5 = vector.shape_cast %4 : vector<1x8x8xbf16> to vector<8x8xbf16>
    %c0_7 = arith.constant 0 : index
    %c0_8 = arith.constant 0 : index
    %c64 = arith.constant 64 : index
    %6 = vector.load %arg3[%c0_7, %c0_8, %c64] : memref<1x8x96xbf16, #tpu.memory_space<vmem>>, vector<1x8x8xbf16>
    %7 = vector.shape_cast %6 : vector<1x8x8xbf16> to vector<8x8xbf16>
    %cst_9 = arith.constant dense<0.000000e+00> : vector<8x8xf32>
    %8 = tpu.matmul %3, %5, %cst_9 {dimension_numbers = #tpu.dot_dimension_numbers<[1], [1], [0], [0], [0, 0, 1, 0], [], []>} : vector<8x8xbf16>, vector<8x8xbf16>, vector<8x8xf32> -> vector<8x8xf32>
    %cst_10 = arith.constant dense<0xFF800000> : vector<8xf32>
    %9 = vector.multi_reduction <maximumf>, %8, %cst_10 [1] : vector<8x8xf32> to vector<8xf32>
    %10 = vector.shape_cast %9 : vector<8xf32> to vector<8x1xf32>
    %11 = vector.broadcast %10 : vector<8x1xf32> to vector<8x8xf32>
    %12 = arith.subf %8, %11 : vector<8x8xf32>
    %13 = math.exp %12 : vector<8x8xf32>
    %cst_11 = arith.constant dense<0.000000e+00> : vector<8xf32>
    %14 = vector.multi_reduction <add>, %13, %cst_11 [1] : vector<8x8xf32> to vector<8xf32>
    %15 = vector.shape_cast %14 : vector<8xf32> to vector<8x1xf32>
    %16 = tpu.reciprocal %15 {approx = true} : vector<8x1xf32> -> vector<8x1xf32>
    %17 = arith.truncf %13 : vector<8x8xf32> to vector<8x8xbf16>
    %cst_12 = arith.constant dense<0.000000e+00> : vector<8x8xf32>
    %18 = tpu.matmul %17, %7, %cst_12 {dimension_numbers = #tpu.dot_dimension_numbers<[1], [0], [0], [1], [0, 0, 1, 1], [], []>} : vector<8x8xbf16>, vector<8x8xbf16>, vector<8x8xf32> -> vector<8x8xf32>
    %19 = vector.broadcast %16 : vector<8x1xf32> to vector<8x8xf32>
    %20 = arith.mulf %18, %19 : vector<8x8xf32>
    %21 = arith.truncf %20 : vector<8x8xf32> to vector<8x8xbf16>
    %c0_13 = arith.constant 0 : index
    %c0_14 = arith.constant 0 : index
    %c8 = arith.constant 8 : index
    %22 = vector.load %arg2[%c0_13, %c0_14, %c8] : memref<1x8x96xbf16, #tpu.memory_space<vmem>>, vector<1x8x8xbf16>
    %23 = vector.shape_cast %22 : vector<1x8x8xbf16> to vector<8x8xbf16>
    %c0_15 = arith.constant 0 : index
    %c0_16 = arith.constant 0 : index
    %c40 = arith.constant 40 : index
    %24 = vector.load %arg3[%c0_15, %c0_16, %c40] : memref<1x8x96xbf16, #tpu.memory_space<vmem>>, vector<1x8x8xbf16>
    %25 = vector.shape_cast %24 : vector<1x8x8xbf16> to vector<8x8xbf16>
    %c0_17 = arith.constant 0 : index
    %c0_18 = arith.constant 0 : index
    %c72 = arith.constant 72 : index
    %26 = vector.load %arg3[%c0_17, %c0_18, %c72] : memref<1x8x96xbf16, #tpu.memory_space<vmem>>, vector<1x8x8xbf16>
    %27 = vector.shape_cast %26 : vector<1x8x8xbf16> to vector<8x8xbf16>
    %cst_19 = arith.constant dense<0.000000e+00> : vector<8x8xf32>
    %28 = tpu.matmul %23, %25, %cst_19 {dimension_numbers = #tpu.dot_dimension_numbers<[1], [1], [0], [0], [0, 0, 1, 0], [], []>} : vector<8x8xbf16>, vector<8x8xbf16>, vector<8x8xf32> -> vector<8x8xf32>
    %cst_20 = arith.constant dense<0xFF800000> : vector<8xf32>
    %29 = vector.multi_reduction <maximumf>, %28, %cst_20 [1] : vector<8x8xf32> to vector<8xf32>
    %30 = vector.shape_cast %29 : vector<8xf32> to vector<8x1xf32>
    %31 = vector.broadcast %30 : vector<8x1xf32> to vector<8x8xf32>
    %32 = arith.subf %28, %31 : vector<8x8xf32>
    %33 = math.exp %32 : vector<8x8xf32>
    %cst_21 = arith.constant dense<0.000000e+00> : vector<8xf32>
    %34 = vector.multi_reduction <add>, %33, %cst_21 [1] : vector<8x8xf32> to vector<8xf32>
    %35 = vector.shape_cast %34 : vector<8xf32> to vector<8x1xf32>
    %36 = tpu.reciprocal %35 {approx = true} : vector<8x1xf32> -> vector<8x1xf32>
    %37 = arith.truncf %33 : vector<8x8xf32> to vector<8x8xbf16>
    %cst_22 = arith.constant dense<0.000000e+00> : vector<8x8xf32>
    %38 = tpu.matmul %37, %27, %cst_22 {dimension_numbers = #tpu.dot_dimension_numbers<[1], [0], [0], [1], [0, 0, 1, 1], [], []>} : vector<8x8xbf16>, vector<8x8xbf16>, vector<8x8xf32> -> vector<8x8xf32>
    %39 = vector.broadcast %36 : vector<8x1xf32> to vector<8x8xf32>
    %40 = arith.mulf %38, %39 : vector<8x8xf32>
    %41 = arith.truncf %40 : vector<8x8xf32> to vector<8x8xbf16>
    %c0_23 = arith.constant 0 : index
    %c0_24 = arith.constant 0 : index
    %c16 = arith.constant 16 : index
    %42 = vector.load %arg2[%c0_23, %c0_24, %c16] : memref<1x8x96xbf16, #tpu.memory_space<vmem>>, vector<1x8x8xbf16>
    %43 = vector.shape_cast %42 : vector<1x8x8xbf16> to vector<8x8xbf16>
    %c0_25 = arith.constant 0 : index
    %c0_26 = arith.constant 0 : index
    %c48 = arith.constant 48 : index
    %44 = vector.load %arg3[%c0_25, %c0_26, %c48] : memref<1x8x96xbf16, #tpu.memory_space<vmem>>, vector<1x8x8xbf16>
    %45 = vector.shape_cast %44 : vector<1x8x8xbf16> to vector<8x8xbf16>
    %c0_27 = arith.constant 0 : index
    %c0_28 = arith.constant 0 : index
    %c80 = arith.constant 80 : index
    %46 = vector.load %arg3[%c0_27, %c0_28, %c80] : memref<1x8x96xbf16, #tpu.memory_space<vmem>>, vector<1x8x8xbf16>
    %47 = vector.shape_cast %46 : vector<1x8x8xbf16> to vector<8x8xbf16>
    %cst_29 = arith.constant dense<0.000000e+00> : vector<8x8xf32>
    %48 = tpu.matmul %43, %45, %cst_29 {dimension_numbers = #tpu.dot_dimension_numbers<[1], [1], [0], [0], [0, 0, 1, 0], [], []>} : vector<8x8xbf16>, vector<8x8xbf16>, vector<8x8xf32> -> vector<8x8xf32>
    %cst_30 = arith.constant dense<0xFF800000> : vector<8xf32>
    %49 = vector.multi_reduction <maximumf>, %48, %cst_30 [1] : vector<8x8xf32> to vector<8xf32>
    %50 = vector.shape_cast %49 : vector<8xf32> to vector<8x1xf32>
    %51 = vector.broadcast %50 : vector<8x1xf32> to vector<8x8xf32>
    %52 = arith.subf %48, %51 : vector<8x8xf32>
    %53 = math.exp %52 : vector<8x8xf32>
    %cst_31 = arith.constant dense<0.000000e+00> : vector<8xf32>
    %54 = vector.multi_reduction <add>, %53, %cst_31 [1] : vector<8x8xf32> to vector<8xf32>
    %55 = vector.shape_cast %54 : vector<8xf32> to vector<8x1xf32>
    %56 = tpu.reciprocal %55 {approx = true} : vector<8x1xf32> -> vector<8x1xf32>
    %57 = arith.truncf %53 : vector<8x8xf32> to vector<8x8xbf16>
    %cst_32 = arith.constant dense<0.000000e+00> : vector<8x8xf32>
    %58 = tpu.matmul %57, %47, %cst_32 {dimension_numbers = #tpu.dot_dimension_numbers<[1], [0], [0], [1], [0, 0, 1, 1], [], []>} : vector<8x8xbf16>, vector<8x8xbf16>, vector<8x8xf32> -> vector<8x8xf32>
    %59 = vector.broadcast %56 : vector<8x1xf32> to vector<8x8xf32>
    %60 = arith.mulf %58, %59 : vector<8x8xf32>
    %61 = arith.truncf %60 : vector<8x8xf32> to vector<8x8xbf16>
    %c0_33 = arith.constant 0 : index
    %c0_34 = arith.constant 0 : index
    %c24 = arith.constant 24 : index
    %62 = vector.load %arg2[%c0_33, %c0_34, %c24] : memref<1x8x96xbf16, #tpu.memory_space<vmem>>, vector<1x8x8xbf16>
    %63 = vector.shape_cast %62 : vector<1x8x8xbf16> to vector<8x8xbf16>
    %c0_35 = arith.constant 0 : index
    %c0_36 = arith.constant 0 : index
    %c56 = arith.constant 56 : index
    %64 = vector.load %arg3[%c0_35, %c0_36, %c56] : memref<1x8x96xbf16, #tpu.memory_space<vmem>>, vector<1x8x8xbf16>
    %65 = vector.shape_cast %64 : vector<1x8x8xbf16> to vector<8x8xbf16>
    %c0_37 = arith.constant 0 : index
    %c0_38 = arith.constant 0 : index
    %c88 = arith.constant 88 : index
    %66 = vector.load %arg3[%c0_37, %c0_38, %c88] : memref<1x8x96xbf16, #tpu.memory_space<vmem>>, vector<1x8x8xbf16>
    %67 = vector.shape_cast %66 : vector<1x8x8xbf16> to vector<8x8xbf16>
    %cst_39 = arith.constant dense<0.000000e+00> : vector<8x8xf32>
    %68 = tpu.matmul %63, %65, %cst_39 {dimension_numbers = #tpu.dot_dimension_numbers<[1], [1], [0], [0], [0, 0, 1, 0], [], []>} : vector<8x8xbf16>, vector<8x8xbf16>, vector<8x8xf32> -> vector<8x8xf32>
    %cst_40 = arith.constant dense<0xFF800000> : vector<8xf32>
    %69 = vector.multi_reduction <maximumf>, %68, %cst_40 [1] : vector<8x8xf32> to vector<8xf32>
    %70 = vector.shape_cast %69 : vector<8xf32> to vector<8x1xf32>
    %71 = vector.broadcast %70 : vector<8x1xf32> to vector<8x8xf32>
    %72 = arith.subf %68, %71 : vector<8x8xf32>
    %73 = math.exp %72 : vector<8x8xf32>
    %cst_41 = arith.constant dense<0.000000e+00> : vector<8xf32>
    %74 = vector.multi_reduction <add>, %73, %cst_41 [1] : vector<8x8xf32> to vector<8xf32>
    %75 = vector.shape_cast %74 : vector<8xf32> to vector<8x1xf32>
    %76 = tpu.reciprocal %75 {approx = true} : vector<8x1xf32> -> vector<8x1xf32>
    %77 = arith.truncf %73 : vector<8x8xf32> to vector<8x8xbf16>
    %cst_42 = arith.constant dense<0.000000e+00> : vector<8x8xf32>
    %78 = tpu.matmul %77, %67, %cst_42 {dimension_numbers = #tpu.dot_dimension_numbers<[1], [0], [0], [1], [0, 0, 1, 1], [], []>} : vector<8x8xbf16>, vector<8x8xbf16>, vector<8x8xf32> -> vector<8x8xf32>
    %79 = vector.broadcast %76 : vector<8x1xf32> to vector<8x8xf32>
    %80 = arith.mulf %78, %79 : vector<8x8xf32>
    %81 = arith.truncf %80 : vector<8x8xf32> to vector<8x8xbf16>
    %82 = tpu.concatenate %21, %41, %61, %81 in 1 : vector<8x8xbf16>, vector<8x8xbf16>, vector<8x8xbf16>, vector<8x8xbf16> -> vector<8x32xbf16>
    %c0_43 = arith.constant 0 : index
    %c0_44 = arith.constant 0 : index
    %83 = vector.load %arg4[%c0_43, %c0_44] : memref<32x32xbf16, #tpu.memory_space<vmem>>, vector<32x32xbf16>
    %c0_45 = arith.constant 0 : index
    %c0_46 = arith.constant 0 : index
    %c0_47 = arith.constant 0 : index
    %84 = vector.load %arg5[%c0_45, %c0_46, %c0_47] : memref<1x8x32xf32, #tpu.memory_space<vmem>>, vector<1x8x32xf32>
    %85 = vector.shape_cast %84 : vector<1x8x32xf32> to vector<8x32xf32>
    %cst_48 = arith.constant dense<0.000000e+00> : vector<8x32xf32>
    %86 = tpu.matmul %82, %83, %cst_48 {dimension_numbers = #tpu.dot_dimension_numbers<[1], [0], [0], [1], [0, 0, 1, 1], [], []>} : vector<8x32xbf16>, vector<32x32xbf16>, vector<8x32xf32> -> vector<8x32xf32>
    %87 = arith.addf %85, %86 : vector<8x32xf32>
    %c0_49 = arith.constant 0 : index
    %c0_50 = arith.constant 0 : index
    %c0_51 = arith.constant 0 : index
    %88 = vector.load %arg5[%c0_49, %c0_50, %c0_51] : memref<1x8x32xf32, #tpu.memory_space<vmem>>, vector<1x8x32xf32>
    %89 = vector.shape_cast %88 : vector<1x8x32xf32> to vector<8x32xf32>
    %90 = vector.shape_cast %87 : vector<8x32xf32> to vector<1x8x32xf32>
    tpu.vector_store %arg5[%c0_49, %c0_50, %c0_51], %90 {strides = array<i32>} : memref<1x8x32xf32, #tpu.memory_space<vmem>>, vector<1x8x32xf32>,
    return
  }
  func.func @transform_0(%arg0: i32, %arg1: i32) -> (i32, i32, i32) {
    %c0_i32 = arith.constant 0 : i32
    %c0_i32_0 = arith.constant 0 : i32
    return %arg0, %arg1, %c0_i32 : i32, i32, i32
  }
  func.func @transform_1(%arg0: i32, %arg1: i32) -> (i32, i32, i32) {
    %c0_i32 = arith.constant 0 : i32
    %c0_i32_0 = arith.constant 0 : i32
    %c0_i32_1 = arith.constant 0 : i32
    return %arg0, %c0_i32, %c0_i32_0 : i32, i32, i32
  }
  func.func @transform_2(%arg0: i32, %arg1: i32) -> (i32, i32) {
    %c0_i32 = arith.constant 0 : i32
    %c0_i32_0 = arith.constant 0 : i32
    %c0_i32_1 = arith.constant 0 : i32
    return %c0_i32, %c0_i32_0 : i32, i32
  }
  func.func @transform_3(%arg0: i32, %arg1: i32) -> (i32, i32, i32) {
    %c0_i32 = arith.constant 0 : i32
    %c0_i32_0 = arith.constant 0 : i32
    return %arg0, %arg1, %c0_i32 : i32, i32, i32
  }
}

</mosaic_0001>

<bundles_post_ra>
// kernel: multi_head_attention.2
= control target key start
LH: loop header
LB: loop body
LE: loop exit
PB: predicated region body
PF: predicated region fallthrough
CT: control target
= control target key end

     0   :  { %7 = vsyncpa [#allocation3], 0  ;;  %s228_s0 = inlined_call_operand.hbm [shape: f32[16,32], index: 0, kind: input, shape index: {}]   ;;  %s229_s1 = inlined_call_operand.hbm [shape: bf16[32,96], index: 1, kind: input, shape index: {}]   ;;  %s230_s2 = inlined_call_operand.vmem [shape: bf16[16,96], index: 2, kind: output, shape index: {}]  }
   0x1   :  { %8 = vsyncpa [#allocation5], 0  ;;  %s193_s9 = smov [#allocation2]  }
   0x2   :  { %s14_s10 = sshll.u32 %s193_s9, 4  ;;  %s15_s10 = int_to_ptr.vmem [resolvable:$true] %s14_s10 }
   0x3   :  { %s157_s11 = scalar_lea.vmem %s15_s10, 256  ;;  %p162_p1 = scmp.lt.s32.totalorder %s15_s10, %s15_s10 }
   0x4   :  { %p158_p0 = scmp.ne.s32.totalorder %s15_s10, %s157_s11  ;;  %p163_p2 = scmp.lt.s32.totalorder %s157_s11, %s157_s11 }
   0x6   :  { %p164_p3 = por %p163_p2, %p162_p1 }
   0x8   :  { %p165_p4 = pnand %p164_p3, %p158_p0 }
   0xa   :  { %168 = shalt.err (!%p165_p4)
}
   0xb   :  { %s194_s12 = smov 128   ;;  %s195_s13 = smov 8  }
   0xc   :  { %20 = dma.hbm_to_vmem [thread:$0]  %s228_s0, 256, %s15_s10, [#allocation3], %s194_s12, %s194_s12, %s195_s13  }
   0xd   :  { %s196_s16 = smov [#allocation4]  }
   0xe   :  { %s26_s17 = sshll.u32 %s196_s16, 4  ;;  %s27_s17 = int_to_ptr.vmem [resolvable:$true] %s26_s17 }
   0xf   :  { %s177_s18 = scalar_lea.vmem %s27_s17, 256  ;;  %p182_p6 = scmp.lt.s32.totalorder %s27_s17, %s27_s17 }
  0x10   :  { %p178_p5 = scmp.ne.s32.totalorder %s27_s17, %s177_s18  ;;  %p183_p7 = scmp.lt.s32.totalorder %s177_s18, %s177_s18 }
  0x12   :  { %p184_p8 = por %p183_p7, %p182_p6 }
  0x14   :  { %p185_p9 = pnand %p184_p8, %p178_p5 }
  0x16   :  { %188 = shalt.err (!%p185_p9)
}
  0x17   :  { %s197_s19 = smov 64   ;;  %s198_s20 = smov 4  }
  0x18   :  { %32 = dma.hbm_to_vmem [thread:$0]  %s229_s1, 256, %s27_s17, [#allocation5], %s197_s19, %s197_s19, %s198_s20  }
  0x19   :  { %189 = dma.done.wait [#allocation3], 256  }
  0x1a   :  { %190 = vsyncadd [#allocation3], 4294967040 }
  0x1b   :  { %191 = dma.done.wait [#allocation5], 256  }
  0x1c   :  { %192 = vsyncadd [#allocation5], 4294967040  ;;  %v199_v0 = vmov 0.0   ;;  %vm200_vm0 = vmmov 0   ;;  %v147_v1 = vld [vmem:[#allocation4 + $0x8] sm:$0xff]   ;;  %v148_v2 = vld [vmem:[#allocation4] sm:$0xff]  }
  0x1d   :  { %131 = vmatprep.subr.bf16.mxu0 %v199_v0  ;;  %135 = vmatprep.mubr.msk.bf16.mxu0 %vm200_vm0, %v199_v0  ;;  %v40_v3 = vld [vmem:[#allocation2] sm:$0xff]  ;;  %v41_v4 = vld [vmem:[#allocation2 + $0x8] sm:$0xff]  ;;  %vm59_vm1 = vcmask 261120   ;;  %vm112_vm2 = vcmask 781312  }
  0x1e   :  { %132 = vmatpush3.bf16.msra.mxu0 %v147_v1  ;;  %v42_v5 = vpack.c.bf16 %v41_v4, %v40_v3 }
  0x1f   :  { %133 = vmatprep.subr.bf16.mxu0 %v199_v0 }
  0x22   :  { %134 = vmatpush3.bf16.msra.mxu0 %v148_v2 }
  0x25   :  { %136 = vmatmul.mubr.msk.bf16.vlgmr.msra.gmra.mxu0 %vm59_vm1, %v42_v5 }
  0xe5   :  { %v97_v6 = vpop.f32.mrf.mxu0 }
  0xe6   :  { %v126_v7 = vpack.c.bf16 %v97_v6, %v97_v6 }
  0xe7   :  { %v137_v8 = vpop.f32.mrf.mxu0 }
  0xe8   :  { %113 = vst.msk [vmem:[%s230_s2] sm:$0xf] %vm112_vm2, %v126_v7 }
  0xe9   :  { %v100_v9 = vpop.f32.mrf.mxu0 }
  0xea   :  { %v127_v10 = vpack.c.bf16 %v100_v9, %v100_v9 }
  0xeb   :  { %v138_v11 = vpop.f32.mrf.mxu0 }
  0xec   :  { %114 = vst.msk [vmem:[%s230_s2 + $0x4] sm:$0xf] %vm112_vm2, %v127_v10 }
  0xed   :  { %119 = vsyncpa [#allocation3], 1 }
  0xee   :  { %120 = vsyncpa [#allocation5], 1 }

// kernel: multi_head_attention.3
= control target key start
LH: loop header
LB: loop body
LE: loop exit
PB: predicated region body
PF: predicated region fallthrough
CT: control target
= control target key end

     0   :  { %8 = vsyncpa [#allocation3], 0  ;;  %s1351_s0 = inlined_call_operand.vmem [shape: bf16[2,8,96], index: 0, kind: input, shape index: {}, may-alias: {0,1}]   ;;  %s1352_s1 = inlined_call_operand.vmem [shape: bf16[2,8,96], index: 1, kind: input, shape index: {}, may-alias: {0,1}]   ;;  %s1353_s2 = inlined_call_operand.vmem [shape: bf16[32,32], index: 2, kind: input, shape index: {}]   ;;  %s1354_s3 = inlined_call_operand.hbm [shape: f32[2,8,32], index: 3, kind: output, shape index: {}]  }
   0x1   :  { %10 = vsyncpa [#allocation3 + $0x1], 0  ;;  %s1146_s12 = smov 0   ;;  %s1148_s13 = smov 0  }
   0x2   :  { %s1150_s14 = smov 0   ;;  %s1152_s15 = smov 0  }
   0x3   :  { %s1154_s16 = smov 0   ;;  %s1156_s17 = smov 0  }
   0x4 LB: > { %s840_s18 = sadd.s32 4294967295, %s1107_s17   ;;  %s841_s19 = sadd.s32 4294967294, %s1107_s17   ;;  %s1107_s17 = sphi %s1156_s17, %s16_s17   ;;  %s1103_s16 = sphi %s1154_s16, %s1361_s16   ;;  %s1099_s15 = sphi %s1152_s15, %s1360_s15   ;;  %s1095_s14 = sphi %s1150_s14, %s1359_s14   ;;  %s1091_s13 = sphi %s1148_s13, %s1358_s13   ;;  %s1087_s12 = sphi %s1146_s12, %s1357_s12  }
   0x5   : > { %s28_s20 = sadd.s32 1, %s1103_s16  ;;  %s112_s21 = sadd.s32 1, %s1095_s14 }
   0x6   : > { %p30_p0 = scmp.ge.s32.totalorder %s28_s20, 2  ;;  %p122_p1 = scmp.ne.s32.totalorder %s1095_s14, %s1091_s13 }
   0x7   : > { %p123_p2 = scmp.eq.s32.totalorder %s840_s18, 1  ;;  %p128_p3 = scmp.ne.s32.totalorder %s1091_s13, %s1087_s12 }
   0x8   : > { %s1363_s20 = smov (%p30_p0, %s28_s20), 0  ;;  %p129_p5 = scmp.eq.s32.totalorder %s841_s19, 1 }
   0x9   : > { %p1186_p4 = por %p123_p2, %p122_p1  ;;  %s107_s23 = ssub.s32 %s1103_s16, %s1363_s20 }
   0xa   : > { %p844_p6 = scmp.ge.s32.totalorder %s1107_s17, 1  ;;  %p110_p7 = scmp.eq.s32.totalorder %s107_s23, 0 }
   0xb   : > { %p1193_p8 = por %p129_p5, %p128_p3  ;;  %p167_p9 = scmp.lt.s32.totalorder %s1107_s17, 3 }
   0xc   : > { %s1199_s25 = scalar_select %p110_p7, %s1095_s14, %s112_s21  }
   0xd   : > { %p168_p10 = pnand %p844_p6, %p167_p9 }
   0xe   : > { %p197_p11 = scmp.lt.s32.totalorder (!%p168_p10), %s1099_s15, 1  ;;  %s1111_s4 = smov (!%p168_p10), 96  }
   0xf   : > { %171 = sbr.rel (%p168_p10) target bundleno = 1443 (0x5a3), region = 32  ;;  %s1112_s8 = smov (!%p168_p10), 64  }
  0x10   : > { %s1113_s9 = smov (!%p168_p10), 88   ;;  %s1114_s10 = smov (!%p168_p10), 120  }
  0x11   : > { %s1115_s11 = smov (!%p168_p10), 80   ;;  %s1116_s18 = smov (!%p168_p10), 112  }
  0x12   : > { %s1117_s19 = smov (!%p168_p10), 72   ;;  %s1118_s21 = smov (!%p168_p10), 104  }
  0x13   : > { %s1119_s23 = smov (!%p168_p10), 48   ;;  %s1122_s5 = smov (!%p168_p10), 8  }
  0x14   : > { %v1109_v0 = vmov 0.0   ;;  %vm1110_vm0 = vmmov 0   ;;  %s198_s26 = scalar_select %p197_p11, %s1099_s15, 1  ;;  %vm218_vm1 = vcmask 64512   ;;  %vm281_vm2 = vcmask 1043456  }
  0x15   : > { %884 = vmatprep.subr.bf16.mxu0 %v1109_v0  ;;  %886 = vmatprep.mubr.msk.bf16.mxu0 %vm1110_vm0, %v1109_v0  ;;  %s1123_s6 = smov 16   ;;  %vm209_vm3 = vcmask 261120   ;;  %vm675_vm4 = vcmask 130048   ;;  %vm678_vm5 = vcmask 195584  }
  0x16   : > { %890 = vmatprep.subr.bf16.mxu1 %v1109_v0  ;;  %892 = vmatprep.mubr.msk.bf16.mxu1 %vm1110_vm0, %v1109_v0  ;;  %s846_s27 = sshll.u32 %s198_s26, 2  ;;  %s1120_s26 = smov 56  }
  0x17   : > { %s207_s30 = scalar_lea.vmem %s1352_s1, %s846_s27  ;;  %s203_s7 = scalar_lea.vmem %s1351_s0, %s846_s27 }
  0x18   : > { %v1212_v1 = vld [vmem:[%s207_s30] ss:$0 sps:$4 sm:$0xff]   ;;  %s1121_s27 = smov 40  }
  0x19   : > { %216 = vrot.lane.b32.xlu0 %v1212_v1, %s1111_s4  ;;  %v211_v4 = vld [vmem:[%s203_s7] sm:$0xf]  ;;  %276 = vrot.lane.b32.xlu1 %v1212_v1, %s1112_s8  ;;  %s194_s7 = sand.u32 1, %s1091_s13  }
  0x1a   : > { %v851_v5 = vcombine.low %v211_v4, %v211_v4  ;;  %s845_s8 = sshll.u32 %s194_s7, 3 }
  0x1d   : > { %332 = vrot.lane.b32.xlu1 %v1212_v1, %s1113_s9  ;;  %s1287_s9 = scalar_lea.vmem [#allocation2], %s845_s8 }
  0x1e   : > { %210 = vst.msk [vmem:[%s1287_s9] sm:$0xff] %vm209_vm3, %v1109_v0 }
  0x21   : > { %330 = vrot.lane.b32.xlu1 %v851_v5, %s1114_s10  ;;  %s1124_s10 = smov 24  }
  0x25   : > { %443 = vrot.lane.b32.xlu1 %v1212_v1, %s1115_s11  ;;  %s862_s11 = sshll.u32 %s1099_s15, 7 }
  0x29   : > { %441 = vrot.lane.b32.xlu1 %v851_v5, %s1116_s18  ;;  %s757_s18 = sshll.u32 %s1287_s9, 4  ;;  %s1303_s18 = int_to_ptr.vmem [resolvable:$true] %s757_s18 }
  0x2a   : > { %s1031_s15 = scalar_lea.vmem %s1303_s18, 128 }
  0x2b   : > { %p1032_p12 = scmp.ne.s32.totalorder %s1303_s18, %s1031_s15 }
  0x2d   : > { %554 = vrot.lane.b32.xlu1 %v1212_v1, %s1117_s19  ;;  %p1033_p13 = pnand %p1032_p12, %p1186_p4 }
  0x2f   : > { %p1034_p0 = pneg %p1033_p13 }
  0x31   : > { %552 = vrot.lane.b32.xlu1 %v851_v5, %s1118_s21 }
  0x8b   : > { %v217_v2 = vpop.permute.xlu0 %216  ;;  %v277_v11 = vpop.permute.xlu1 %276 }
  0x8c   : > { %v223_v3 = vsel %vm218_vm1, %v217_v2, 0  ;;  %v283_v12 = vsel %vm281_vm2, %v277_v11, 0 }
  0x8d   : > { %885 = vmatpush3.bf16.xpose.msra.mxu0 %v223_v3  ;;  %891 = vmatpush3.bf16.msra.mxu1 %v283_v12  ;;  %v1013_v12 = vld [vmem:[%s1353_s2 + $0x8] sm:$0xff]  }
  0x8e   : > { %902 = vmatprep.subr.bf16.mxu0 %v1109_v0  ;;  %896 = vmatprep.subr.bf16.mxu1 %v1109_v0 }
  0x8f   : > { %v333_v16 = vpop.permute.xlu1 %332 }
  0x90   : > { %v338_v19 = vsel %vm218_vm1, %v333_v16, 0 }
  0x93   : > { %v331_v18 = vpop.permute.xlu1 %330 }
  0x94   : > { %887 = vmatmul.mubr.msk.bf16.vlgmr.msra.gmra.mxu0 %vm218_vm1, %v211_v4 }
  0x95   : > { %904 = vmatprep.mubr.msk.bf16.mxu0 %vm1110_vm0, %v1109_v0 }
  0x97   : > { %v444_v21 = vpop.permute.xlu1 %443 }
  0x98   : > { %v449_v22 = vsel %vm218_vm1, %v444_v21, 0 }
  0x9b   : > { %v442_v23 = vpop.permute.xlu1 %441 }
  0x9f   : > { %v555_v24 = vpop.permute.xlu1 %554 }
  0xa0   : > { %v560_v25 = vsel %vm218_vm1, %v555_v24, 0 }
  0xa3   : > { %v553_v26 = vpop.permute.xlu1 %552 }
 0x154   : > { %v259_v6 = vpop.f32.mrf.mxu0 }
 0x155   : > { %v265_v7 = vsel %vm218_vm1, %v259_v6, -inf }
 0x156   : > { %266 = vmax.xlane.f32.xlu0 %v265_v7  ;;  %v888_v8 = vpop.f32.mrf.mxu0 }
 0x158   : > { %v262_v9 = vpop.f32.mrf.mxu0 }
 0x15a   : > { %v889_v10 = vpop.f32.mrf.mxu0 }
 0x1df   : > { %v267_v13 = vpop.xlane.xlu0 %266 }
 0x1e0   : > { %v268_v14 = vsub.f32 %v259_v6, %v267_v13 }
 0x1e2   : > { %v269_v15 = vmul.f32 1.442695, %v268_v14 }
 0x1e4   : > { %1015 = vpow2.f32 %v269_v15  ;;  %v1014_v15 = vld [vmem:[%s1353_s2] sm:$0xff]  }
 0x1f1   : > { %v1230_v17 = vpop.eup %1015 }
 0x1f2   : > { %v275_v20 = vpack.c.bf16 %v1230_v17, %v1230_v17  ;;  %v271_v7 = vsel %vm218_vm1, %v1230_v17, 0.0 }
 0x1f4   : > { %893 = vmatmul.mubr.msk.bf16.vlgmr.msra.gmra.mxu1 %vm218_vm1, %v275_v20 }
 0x1f5   : > { %897 = vmatpush3.bf16.xpose.msra.mxu1 %v338_v19  ;;  %898 = vmatprep.mubr.msk.bf16.mxu1 %vm1110_vm0, %v1109_v0 }
 0x1f6   : > { %908 = vmatprep.subr.bf16.mxu1 %v1109_v0 }
 0x1fc   : > { %899 = vmatmul.mubr.msk.bf16.vlgmr.msra.gmra.mxu1 %vm218_vm1, %v331_v18 }
 0x1fd   : > { %909 = vmatpush3.bf16.xpose.msra.mxu1 %v449_v22  ;;  %910 = vmatprep.mubr.msk.bf16.mxu1 %vm1110_vm0, %v1109_v0 }
 0x1fe   : > { %920 = vmatprep.subr.bf16.mxu1 %v1109_v0 }
 0x204   : > { %911 = vmatmul.mubr.msk.bf16.vlgmr.msra.gmra.mxu1 %vm218_vm1, %v442_v23 }
 0x205   : > { %921 = vmatpush3.bf16.xpose.msra.mxu1 %v560_v25  ;;  %922 = vmatprep.mubr.msk.bf16.mxu1 %vm1110_vm0, %v1109_v0 }
 0x206   : > { %932 = vmatprep.subr.bf16.mxu1 %v1109_v0 }
 0x20c   : > { %923 = vmatmul.mubr.msk.bf16.vlgmr.msra.gmra.mxu1 %vm218_vm1, %v553_v26 }
 0x20d   : > { %936 = vmatprep.mubr.msk.bf16.mxu1 %vm1110_vm0, %v1109_v0  ;;  %933 = vmatpush3.bf16.msra.mxu1 %v1013_v12 }
 0x20e   : > { %934 = vmatprep.subr.bf16.mxu1 %v1109_v0 }
 0x211   : > { %935 = vmatpush3.bf16.msra.mxu1 %v1014_v15 }
 0x2b4   : > { %v1252_v27 = vpop.f32.mrf.mxu1 }
 0x2b6   : > { %v894_v28 = vpop.f32.mrf.mxu1 }
 0x2b8   : > { %v322_v29 = vpop.f32.mrf.mxu1 }
 0x2ba   : > { %v895_v30 = vpop.f32.mrf.mxu1 }
 0x2bc   : > { %v374_v31 = vpop.f32.mrf.mxu1 }
 0x2bd   : > { %v380_v32 = vsel %vm218_vm1, %v374_v31, -inf }
 0x2be   : > { %381 = vmax.xlane.f32.xlu1 %v380_v32  ;;  %v900_v33 = vpop.f32.mrf.mxu1 }
 0x2c0   : > { %v377_v34 = vpop.f32.mrf.mxu1 }
 0x2c2   : > { %v901_v35 = vpop.f32.mrf.mxu1 }
 0x2c4   : > { %v485_v36 = vpop.f32.mrf.mxu1 }
 0x2c5   : > { %v491_v37 = vsel %vm218_vm1, %v485_v36, -inf }
 0x2c6   : > { %492 = vmax.xlane.f32.xlu0 %v491_v37  ;;  %v912_v38 = vpop.f32.mrf.mxu1 }
 0x2c8   : > { %v488_v39 = vpop.f32.mrf.mxu1 }
 0x2ca   : > { %v913_v40 = vpop.f32.mrf.mxu1 }
 0x2cc   : > { %v596_v41 = vpop.f32.mrf.mxu1 }
 0x2cd   : > { %v602_v45 = vsel %vm218_vm1, %v596_v41, -inf }
 0x2ce   : > { %v924_v42 = vpop.f32.mrf.mxu1 }
 0x2cf   : > { %502 = vrot.lane.b32.xlu1 %v1212_v1, %s1119_s23  ;;  %s1301_s23 = scalar_lea.hbm %s1354_s3, %s862_s11 }
 0x2d0   : > { %v599_v43 = vpop.f32.mrf.mxu1 }
 0x2d2   : > { %v925_v44 = vpop.f32.mrf.mxu1 }
 0x2d3   : > { %v685_v44 = vld [vmem:[%s1287_s9] sm:$0xff] }
 0x2dc   : > { %391 = vrot.lane.b32.xlu0 %v1212_v1, %s1120_s26  ;;  %s743_s26 = scalar_lea.sflag [#allocation3], %s194_s7 }
 0x2fb   : > { %603 = vmax.xlane.f32.xlu0 %v602_v45 }
 0x311   : > { %613 = vrot.lane.b32.xlu0 %v1212_v1, %s1121_s27  ;;  %s1125_s27 = smov [#allocation2]  }
 0x312   : > { %s1035_s28 = sshll.u32 %s1125_s27, 4  ;;  %s1036_s28 = int_to_ptr.vmem [resolvable:$false] %s1035_s28 }
 0x313   : > { %s1037_s29 = scalar_lea.vmem %s1036_s28, 256  ;;  %p1038_p1 = scmp.lt.s32.totalorder %s1303_s18, %s1036_s28 }
 0x314   : > { %p1039_p2 = scmp.lt.s32.totalorder %s1037_s29, %s1031_s15 }
 0x316   : > { %p1040_p3 = por %p1039_p2, %p1038_p1 }
 0x318   : > { %p1041_p5 = pnand %p1040_p3, %p1034_p0 }
 0x347   : > { %v382_v46 = vpop.xlane.xlu1 %381 }
 0x348   : > { %v383_v47 = vsub.f32 %v374_v31, %v382_v46 }
 0x34a   : > { %v384_v48 = vmul.f32 1.442695, %v383_v47 }
 0x34b   : > { %v503_v54 = vpop.permute.xlu1 %502 }
 0x34c   : > { %1017 = vpow2.f32 %v384_v48  ;;  %v508_v58 = vsel %vm281_vm2, %v503_v54, 0 }
 0x34f   : > { %v493_v49 = vpop.xlane.xlu0 %492 }
 0x350   : > { %v494_v50 = vsub.f32 %v485_v36, %v493_v49 }
 0x352   : > { %v495_v51 = vmul.f32 1.442695, %v494_v50 }
 0x353   : > { %v392_v52 = vpop.permute.xlu0 %391 }
 0x354   : > { %1019 = vpow2.f32 %v495_v51  ;;  %v397_v53 = vsel %vm281_vm2, %v392_v52, 0 }
 0x355   : > { %903 = vmatpush3.bf16.msra.mxu0 %v397_v53 }
 0x356   : > { %914 = vmatprep.subr.bf16.mxu0 %v1109_v0 }
 0x359   : > { %v1018_v55 = vpop.eup %1017 }
 0x35a   : > { %v386_v56 = vsel %vm218_vm1, %v1018_v55, 0.0  ;;  %v390_v57 = vpack.c.bf16 %v1018_v55, %v1018_v55 }
 0x35b   : > { %387 = vadd.xlane.f32.xlu0 %v386_v56 }
 0x35c   : > { %905 = vmatmul.mubr.msk.bf16.vlgmr.msra.gmra.mxu0 %vm218_vm1, %v390_v57 }
 0x35d   : > { %915 = vmatpush3.bf16.msra.mxu0 %v508_v58  ;;  %916 = vmatprep.mubr.msk.bf16.mxu0 %vm1110_vm0, %v1109_v0 }
 0x35e   : > { %926 = vmatprep.subr.bf16.mxu0 %v1109_v0 }
 0x361   : > { %v1020_v59 = vpop.eup %1019 }
 0x362   : > { %v497_v60 = vsel %vm218_vm1, %v1020_v59, 0.0  ;;  %v501_v61 = vpack.c.bf16 %v1020_v59, %v1020_v59 }
 0x363   : > { %498 = vadd.xlane.f32.xlu1 %v497_v60 }
 0x364   : > { %917 = vmatmul.mubr.msk.bf16.vlgmr.msra.gmra.mxu0 %vm218_vm1, %v501_v61 }
 0x365   : > { %928 = vmatprep.mubr.msk.bf16.mxu0 %vm1110_vm0, %v1109_v0 }
 0x384   : > { %v604_v62 = vpop.xlane.xlu0 %603 }
 0x385   : > { %v605_v63 = vsub.f32 %v596_v41, %v604_v62 }
 0x387   : > { %v606_v1 = vmul.f32 1.442695, %v605_v63 }
 0x388   : > { %v614_v2 = vpop.permute.xlu0 %613 }
 0x389   : > { %1021 = vpow2.f32 %v606_v1  ;;  %v619_v3 = vsel %vm281_vm2, %v614_v2, 0 }
 0x38a   : > { %927 = vmatpush3.bf16.msra.mxu0 %v619_v3 }
 0x396   : > { %v1022_v4 = vpop.eup %1021 }
 0x397   : > { %v608_v5 = vsel %vm218_vm1, %v1022_v4, 0.0  ;;  %v612_v6 = vpack.c.bf16 %v1022_v4, %v1022_v4 }
 0x398   : > { %609 = vadd.xlane.f32.xlu0 %v608_v5 }
 0x399   : > { %929 = vmatmul.mubr.msk.bf16.vlgmr.msra.gmra.mxu0 %vm218_vm1, %v612_v6 }
 0x39c   : > { %272 = vadd.xlane.f32.xlu0 %v271_v7 }
 0x3e4   : > { %v388_v8 = vpop.xlane.xlu0 %387 }
 0x3e5   : > { %1023 = vrcp.f32 %v388_v8 }
 0x3ec   : > { %v499_v9 = vpop.xlane.xlu1 %498 }
 0x3ed   : > { %1025 = vrcp.f32 %v499_v9 }
 0x3f2   : > { %v1024_v10 = vpop.eup %1023 }
 0x3fa   : > { %v1026_v19 = vpop.eup %1025 }
 0x41c   : > { %v433_v11 = vpop.f32.mrf.mxu0 }
 0x41d   : > { %v439_v13 = vmul.f32 %v1024_v10, %v433_v11 }
 0x41e   : > { %v906_v14 = vpop.f32.mrf.mxu0 }
 0x41f   : > { %v440_v16 = vpack.c.bf16 %v439_v13, %v439_v13 }
 0x420   : > { %v436_v17 = vpop.f32.mrf.mxu0 }
 0x421   : > { %664 = vrot.lane.b32.xlu0 %v440_v16, %s1122_s5  ;;  %v610_v26 = vpop.xlane.xlu0 %609 }
 0x422   : > { %v907_v18 = vpop.f32.mrf.mxu0  ;;  %1027 = vrcp.f32 %v610_v26 }
 0x424   : > { %v544_v20 = vpop.f32.mrf.mxu0 }
 0x425   : > { %v550_v21 = vmul.f32 %v1026_v19, %v544_v20  ;;  %v273_v35 = vpop.xlane.xlu0 %272 }
 0x426   : > { %v918_v22 = vpop.f32.mrf.mxu0  ;;  %1029 = vrcp.f32 %v273_v35 }
 0x427   : > { %v551_v23 = vpack.c.bf16 %v550_v21, %v550_v21 }
 0x428   : > { %v547_v24 = vpop.f32.mrf.mxu0 }
 0x429   : > { %667 = vrot.lane.b32.xlu1 %v551_v23, %s1123_s6 }
 0x42a   : > { %v919_v25 = vpop.f32.mrf.mxu0 }
 0x42f   : > { %v1028_v28 = vpop.eup %1027 }
 0x433   : > { %v1030_v36 = vpop.eup %1029 }
 0x434   : > { %v325_v37 = vmul.f32 %v1030_v36, %v1252_v27 }
 0x436   : > { %v326_v39 = vpack.c.bf16 %v325_v37, %v325_v37 }
 0x459   : > { %v655_v29 = vpop.f32.mrf.mxu0 }
 0x45a   : > { %v661_v30 = vmul.f32 %v1028_v28, %v655_v29 }
 0x45b   : > { %v930_v31 = vpop.f32.mrf.mxu0 }
 0x45c   : > { %v662_v32 = vpack.c.bf16 %v661_v30, %v661_v30 }
 0x45d   : > { %v658_v33 = vpop.f32.mrf.mxu0 }
 0x45e   : > { %670 = vrot.lane.b32.xlu0 %v662_v32, %s1124_s10 }
 0x45f   : > { %v931_v34 = vpop.f32.mrf.mxu0 }
 0x493   : > { %v665_v38 = vpop.permute.xlu0 %664 }
 0x494   : > { %v674_v40 = vsel %vm218_vm1, %v326_v39, %v665_v38 }
 0x49b   : > { %v668_v0 = vpop.permute.xlu1 %667 }
 0x49c   : > { %v677_v41 = vsel %vm675_vm4, %v674_v40, %v668_v0 }
 0x4d0   : > { %v671_v42 = vpop.permute.xlu0 %670 }
 0x4d1   : > { %v680_v43 = vsel %vm678_vm5, %v677_v41, %v671_v42 }
 0x4d2   : > { %937 = vmatmul.mubr.msk.bf16.vlgmr.msra.gmra.mxu1 %vm209_vm3, %v680_v43 }
 0x592   : > { %v734_v45 = vpop.f32.mrf.mxu1 }
 0x593   : > { %v740_v27 = vadd.f32 %v734_v45, %v685_v44 }
 0x594   : > { %v938_v46 = vpop.f32.mrf.mxu1 }
 0x595   : > { %741 = vst.msk [vmem:[%s1287_s9] sm:$0xff] %vm209_vm3, %v740_v27 }
 0x596   : > { %v737_v47 = vpop.f32.mrf.mxu1 }
 0x597   : > { %1044 = shalt.err (!%p1041_p5)
}
 0x598   : > { %s1045_s30 = scalar_lea.hbm %s1301_s23, 128  ;;  %s1049_s6 = scalar_lea.hbm %s1354_s3, 256 }
 0x599   : > { %p1046_p6 = scmp.ne.s32.totalorder %s1301_s23, %s1045_s30  ;;  %p1050_p10 = scmp.lt.s32.totalorder %s1301_s23, %s1354_s3 }
 0x59a   : > { %p1051_p11 = scmp.lt.s32.totalorder %s1049_s6, %s1045_s30 }
 0x59b   : > { %p1047_p7 = pnand %p1046_p6, %p1186_p4 }
 0x59c   : > { %p1052_p12 = por %p1051_p11, %p1050_p10 }
 0x59d   : > { %p1048_p9 = pneg %p1047_p7 }
 0x59f   : > { %p1053_p13 = pnand %p1052_p12, %p1048_p9 }
 0x5a1   : > { %1056 = shalt.err (!%p1053_p13)
}
 0x5a2   : > { %940 = dma.vmem_to_hbm [thread:$0]  (%p1186_p4), %s1303_s18, 128, %s1301_s23, %s743_s26   ;;  %v939_v48 = vpop.f32.mrf.mxu1 }
 0x5a3 PF: > { %p946_p0 = scmp.ge.s32.totalorder %s1107_s17, 2  ;;  %s769_s9 = sand.u32 1, %s1087_s12  }
 0x5a4   : > { %s770_s10 = scalar_lea.sflag [#allocation3], %s769_s9 }
 0x5a5   : > { %p943_p1 = pnand %p946_p0, %p1193_p8 }
 0x5a7   : > { %p944_p2 = pneg %p943_p1 }
 0x5a9   : > { %1082 = dma.done.wait (%p944_p2), %s770_s10, 128  }
 0x5aa   : > { %1084 = vsyncadd (%p944_p2), %s770_s10, 4294967168  ;;  %s16_s17 = sadd.s32 1, %s1107_s17   ;;  %s1357_s12 = smov %s1091_s13 }
 0x5ab   : > { %p13_p3 = scmp.ge.s32.totalorder %s16_s17, 4   ;;  %s1358_s13 = smov %s1095_s14 }
 0x5ac   : > { %s1359_s14 = smov %s1199_s25  ;;  %s1360_s15 = smov %s1103_s16 }
 0x5ad   : > { %s1361_s16 = smov %s1363_s20  ;;  %15 = sbr.rel (!%p13_p3) target bundleno = 4 (0x4), region = 70 }
 0x5b2   :  { %775 = vsyncpa [#allocation3], 1 }
 0x5b3   :  { %777 = vsyncpa [#allocation3 + $0x1], 1 }

</bundles_post_ra>
